<compile_context>
chip_gen: v7x
topology: tpu7x:2x2x1
jax: 0.10.0
libtpu: 0.0.40
codegen_flags: <defaults>
</compile_context>

<pallas_src>
import jax
import jax.numpy as jnp
from jax.experimental import pallas as pl
from jax.experimental.pallas import tpu as pltpu


# Conservative, generation-portable VMEM numbers (v7x has only 64 MiB per TensorCore).
_VMEM_BUDGET = 40 * 1024 * 1024   # bytes we allow ourselves for tiles + resident operands
_VMEM_LIMIT = 48 * 1024 * 1024    # explicit scoped-VMEM request (< 64 MiB physical on v7x)


def _fused_small_kernel(x_ref, w_ref, b_ref, o_ref):
    """Whole-tensor path (x, W, b fully VMEM-resident, no grid).

    Global min/max is computed in-kernel -> x is read from HBM exactly once.
    """
    x = x_ref[...]                                   # (M, H) f32
    t_min = jnp.min(x)
    t_max = jnp.max(x)
    inv_range = 1.0 / (t_max - t_min)                # Inf/NaN for constant x, same as reference
    norm = (x - t_min) * inv_range
    y = jnp.dot(norm.astype(w_ref.dtype), w_ref[...],
                preferred_element_type=jnp.float32)
    # Dropout (eval mode == identity) + residual.
    o_ref[...] = x + (y + b_ref[...]).astype(o_ref.dtype)


def _tiled_kernel(x_ref, w_ref, b_ref, o_ref):
    """Row-tiled path: the min-max affine is pre-folded into (W', b') by the wrapper.

    x_ref : VMEM f32[tm, H]   (pipelined row tile)
    w_ref : VMEM [H, H]       (f32 or bf16; constant index_map -> resident across grid steps)
    b_ref : VMEM f32[1, H]
    o_ref : VMEM f32[tm, H]
    """
    x = x_ref[...]                                   # (tm, H) f32
    y = jnp.dot(x.astype(w_ref.dtype), w_ref[...],   # MXU matmul, f32 accumulation
                preferred_element_type=jnp.float32)
    o_ref[...] = x + (y + b_ref[...]).astype(o_ref.dtype)


def sublayer_connection(x, w, b, *, tm=None, matmul_dtype=jnp.float32, force_tiled=False):
    """x: [B, S, H] float32; w: [H, H]; b: [H]. Returns [B, S, H].

    tm            : row-tile size over the flattened M = B*S axis (None -> derived from VMEM budget).
    matmul_dtype  : jnp.float32 (exact) or jnp.bfloat16 (fast MXU feed, f32 accumulation).
                    On v5e / v7x bf16 is the recommended default for large H.
    force_tiled   : skip the fused small path (used by the demo to exercise the grid pipeline).
    """
    B, S, H = x.shape
    M = B * S
    x2d = x.reshape(M, H)
    itemsize_w = jnp.dtype(matmul_dtype).itemsize
    b2d = b.reshape(1, H).astype(jnp.float32)

    # ------------------------------------------------------------------ fused small path
    # x + out + W + b all resident, no pipelining, min/max in-kernel (one HBM read of x).
    small_bytes = 2 * M * H * 4 + H * H * itemsize_w + H * 4
    if not force_tiled and small_bytes <= _VMEM_BUDGET:
        out2d = pl.pallas_call(
            _fused_small_kernel,
            out_shape=jax.ShapeDtypeStruct((M, H), x.dtype),
            compiler_params=pltpu.CompilerParams(vmem_limit_bytes=_VMEM_LIMIT),
        )(x2d, w.astype(matmul_dtype), b2d)
        return out2d.reshape(B, S, H)

    # ------------------------------------------------------------------ tiled path
    # Pass 1 (wrapper): global min/max, then fold the affine norm into the dense params.
    #   norm(x) @ W + b  ==  x @ (inv_range*W) + (b - t_min*inv_range*colsum(W))
    t_min = jnp.min(x2d)
    t_max = jnp.max(x2d)
    inv_range = 1.0 / (t_max - t_min)                 # Inf/NaN for constant x, as in the reference
    w_folded = (w * inv_range).astype(matmul_dtype)
    b_folded = (b - (t_min * inv_range) * jnp.sum(w, axis=0)).reshape(1, H).astype(jnp.float32)

    # Derive tm from the VMEM byte budget:
    #   x tile + out tile are double-buffered f32; W'/b' have constant index_maps (resident),
    #   charged at 2x to cover their pipeline buffers.
    w_resident = 2 * H * H * itemsize_w
    b_resident = 2 * H * 4
    per_row_bytes = (2 + 2) * H * 4                   # (x + out) x 2 pipeline buffers, f32
    tm_budget = (_VMEM_BUDGET - w_resident - b_resident) // per_row_bytes
    tm_budget = max(16, (tm_budget // 16) * 16)       # NOTE: for very large H, tile W's columns
                                                      # with a second grid axis instead.
    tm = tm_budget if tm is None else min(int(tm), int(tm_budget))
    tm = min(tm, M)
    if tm < M:
        # Multiple of 16: bf16 sublane packing (also covers f32's multiple-of-8 requirement).
        tm = max(16, (tm // 16) * 16)
    grid = (pl.cdiv(M, tm),)

    out2d = pl.pallas_call(
        _tiled_kernel,
        out_shape=jax.ShapeDtypeStruct((M, H), x.dtype),
        grid_spec=pltpu.PrefetchScalarGridSpec(
            num_scalar_prefetch=0,
            grid=grid,
            in_specs=[
                # x: pipelined row tiles, lane-dense in H.
                pl.BlockSpec((tm, H), lambda i: (i, 0)),
                # W': constant index_map -> stays resident in VMEM across grid steps.
                pl.BlockSpec((H, H), lambda i: (0, 0)),
                # b': kept 2-D (1, H) for lane layout; resident.
                pl.BlockSpec((1, H), lambda i: (0, 0)),
            ],
            out_specs=pl.BlockSpec((tm, H), lambda i: (i, 0)),
        ),
        compiler_params=pltpu.CompilerParams(
            # Row tiles are independent -> megacore sharding on v7x, no-op on v5e/v6e.
            dimension_semantics=("parallel",),
            vmem_limit_bytes=_VMEM_LIMIT,
        ),
    )(x2d, w_folded, b_folded)

    return out2d.reshape(B, S, H)


def reference(x, w, b):
    t_max = jnp.max(x)
    t_min = jnp.min(x)
    norm = (x - t_min) / (t_max - t_min)
    y = jnp.einsum("bsh,hk->bsk", norm, w) + b
    return x + y


if __name__ == "__main__":
    # Small but lane-/MXU-friendly shapes: H multiple of 128, M = B*S = 128 rows so that
    # tm=64 below exercises a real multi-step (grid=2) pipeline on the tiled path.
    B, S, H = 2, 64, 128
    key = jax.random.PRNGKey(0)
    kx, kw, kb = jax.random.split(key, 3)

    x = jax.random.normal(kx, (B, S, H), dtype=jnp.float32)
    # Deterministic synthetic "sublayer" parameters (dense layer on the hidden dim).
    w = jax.random.normal(kw, (H, H), dtype=jnp.float32) * 0.05
    b = jax.random.normal(kb, (H,), dtype=jnp.float32) * 0.01

    ref = reference(x, w, b)

    # 1) Fused single-call path (x + W fit in VMEM): min/max computed in-kernel.
    out_fused = jax.block_until_ready(sublayer_connection(x, w, b))
    assert out_fused.shape == (B, S, H)
    assert jnp.allclose(out_fused, ref, atol=2e-4, rtol=2e-4), "fused path mismatch vs reference"

    # 2) Tiled path (forced, tm=64 -> 2 grid steps), exact f32 matmul with folded norm.
    out_tiled = jax.block_until_ready(
        sublayer_connection(x, w, b, tm=64, force_tiled=True, matmul_dtype=jnp.float32))
    assert jnp.allclose(out_tiled, ref, atol=2e-4, rtol=2e-4), "tiled f32 path mismatch vs reference"

    # 3) Tiled path, bf16-fed MXU (f32 accumulation) — looser tolerance by construction.
    out_bf16 = jax.block_until_ready(
        sublayer_connection(x, w, b, tm=64, force_tiled=True, matmul_dtype=jnp.bfloat16))
    assert jnp.allclose(out_bf16, ref, atol=3e-2, rtol=3e-2), "tiled bf16 path mismatch vs reference"

    print("KERNEL_OK")
</pallas_src>

<mosaic_0001>
module attributes {stable_mosaic.version = 11 : i64} {
  func.func @_fused_small_kernel(%arg0: memref<128x128xf32, #tpu.memory_space<vmem>>, %arg1: memref<128x128xf32, #tpu.memory_space<vmem>>, %arg2: memref<1x128xf32, #tpu.memory_space<vmem>>, %arg3: memref<128x128xf32, #tpu.memory_space<vmem>>) attributes {dimension_semantics = [], scalar_prefetch = 0 : i64, scratch_operands = 0 : i64, tpu.core_type = #tpu.core_type<tc>} {
    %c0 = arith.constant 0 : index
    %c0_0 = arith.constant 0 : index
    %0 = vector.load %arg0[%c0, %c0_0] : memref<128x128xf32, #tpu.memory_space<vmem>>, vector<128x128xf32>
    %1 = vector.shape_cast %0 : vector<128x128xf32> to vector<1x128x128xf32>
    %cst = arith.constant dense<0x7F800000> : vector<1xf32>
    %2 = vector.multi_reduction <minimumf>, %1, %cst [1, 2] : vector<1x128x128xf32> to vector<1xf32>
    %3 = vector.shape_cast %2 : vector<1xf32> to vector<1x1x1xf32>
    %4 = vector.extract %3[0, 0, 0] : f32 from vector<1x1x1xf32>
    %5 = vector.shape_cast %0 : vector<128x128xf32> to vector<1x128x128xf32>
    %cst_1 = arith.constant dense<0xFF800000> : vector<1xf32>
    %6 = vector.multi_reduction <maximumf>, %5, %cst_1 [1, 2] : vector<1x128x128xf32> to vector<1xf32>
    %7 = vector.shape_cast %6 : vector<1xf32> to vector<1x1x1xf32>
    %8 = vector.extract %7[0, 0, 0] : f32 from vector<1x1x1xf32>
    %9 = arith.subf %8, %4 : f32
    %cst_2 = arith.constant 1.000000e+00 : f32
    %10 = arith.divf %cst_2, %9 : f32
    %11 = vector.broadcast %4 : f32 to vector<128x128xf32>
    %12 = arith.subf %0, %11 : vector<128x128xf32>
    %13 = vector.broadcast %10 : f32 to vector<128x128xf32>
    %14 = arith.mulf %12, %13 : vector<128x128xf32>
    %c0_3 = arith.constant 0 : index
    %c0_4 = arith.constant 0 : index
    %15 = vector.load %arg1[%c0_3, %c0_4] : memref<128x128xf32, #tpu.memory_space<vmem>>, vector<128x128xf32>
    %cst_5 = arith.constant dense<0.000000e+00> : vector<128x128xf32>
    %16 = tpu.matmul %14, %15, %cst_5 {dimension_numbers = #tpu.dot_dimension_numbers<[1], [0], [0], [1], [0, 0, 1, 1], [], []>} : vector<128x128xf32>, vector<128x128xf32>, vector<128x128xf32> -> vector<128x128xf32>
    %c0_6 = arith.constant 0 : index
    %c0_7 = arith.constant 0 : index
    %17 = vector.load %arg2[%c0_6, %c0_7] : memref<1x128xf32, #tpu.memory_space<vmem>>, vector<1x128xf32>
    %18 = vector.broadcast %17 : vector<1x128xf32> to vector<128x128xf32>
    %19 = arith.addf %16, %18 : vector<128x128xf32>
    %20 = arith.addf %0, %19 : vector<128x128xf32>
    %c0_8 = arith.constant 0 : index
    %c0_9 = arith.constant 0 : index
    %21 = vector.load %arg3[%c0_8, %c0_9] : memref<128x128xf32, #tpu.memory_space<vmem>>, vector<128x128xf32>
    tpu.vector_store %arg3[%c0_8, %c0_9], %20 {strides = array<i32>} : memref<128x128xf32, #tpu.memory_space<vmem>>, vector<128x128xf32>,
    return
  }
}

</mosaic_0001>

<bundles_post_ra>
// kernel: tpu_custom_call.1
= control target key start
LH: loop header
LB: loop body
LE: loop exit
PB: predicated region body
PF: predicated region fallthrough
CT: control target
= control target key end

     0   :  { %8 = vsyncpa [#allocation3], 0  ;;  %s754_s0 = inlined_call_operand.hbm [shape: f32[128,128], index: 0, kind: input, shape index: {}]   ;;  %s755_s1 = inlined_call_operand.hbm [shape: f32[128,128], index: 1, kind: input, shape index: {}]   ;;  %s756_s2 = inlined_call_operand.vmem [shape: f32[1,128], index: 2, kind: input, shape index: {}]   ;;  %s757_s3 = inlined_call_operand.hbm [shape: f32[128,128], index: 3, kind: output, shape index: {}]  }
   0x1   :  { %9 = vsyncpa [#allocation6], 0 }
   0x2   :  { %10 = vsyncpa [#allocation4], 0  ;;  %s585_s12 = smov [#allocation2]   ;;  %s513_s16 = scalar_lea.hbm %s754_s0, 2048 }
   0x3   :  { %s16_s13 = sshll.u32 %s585_s12, 4  ;;  %p514_p0 = scmp.ne.s32.totalorder %s754_s0, %s513_s16  ;;  %s17_s13 = int_to_ptr.vmem [resolvable:$true] %s16_s13 }
   0x4   :  { %p517_p1 = scmp.lt.u32.totalorder %s513_s16, %s754_s0 }
   0x6   :  { %p519_p2 = pnand %p517_p1, %p514_p0 }
   0x8   :  { %522 = shalt.err (!%p519_p2)
}
   0x9   :  { %s523_s21 = scalar_lea.vmem %s17_s13, 2048  ;;  %p528_p4 = scmp.lt.s32.totalorder %s17_s13, %s17_s13 }
   0xa   :  { %p524_p3 = scmp.ne.s32.totalorder %s17_s13, %s523_s21  ;;  %p529_p5 = scmp.lt.s32.totalorder %s523_s21, %s523_s21 }
   0xc   :  { %p530_p6 = por %p529_p5, %p528_p4 }
   0xe   :  { %p531_p7 = pnand %p530_p6, %p524_p3 }
  0x10   :  { %534 = shalt.err (!%p531_p7)
}
  0x11   :  { %s586_s22 = smov 128   ;;  %s587_s23 = smov 8  }
  0x12   :  { %22 = dma.hbm_to_vmem [thread:$0]  %s754_s0, 2048, %s17_s13, [#allocation3], %s586_s22, %s586_s22, %s587_s23  }
  0x13   :  { %s588_s26 = smov [#allocation5]   ;;  %s535_s30 = scalar_lea.hbm %s755_s1, 2048 }
  0x14   :  { %s28_s27 = sshll.u32 %s588_s26, 4  ;;  %p536_p8 = scmp.ne.s32.totalorder %s755_s1, %s535_s30  ;;  %s29_s27 = int_to_ptr.vmem [resolvable:$true] %s28_s27 }
  0x15   :  { %p539_p9 = scmp.lt.u32.totalorder %s535_s30, %s755_s1 }
  0x17   :  { %p541_p10 = pnand %p539_p9, %p536_p8 }
  0x19   :  { %544 = shalt.err (!%p541_p10)
}
  0x1a   :  { %s545_s8 = scalar_lea.vmem %s29_s27, 2048  ;;  %p550_p12 = scmp.lt.s32.totalorder %s29_s27, %s29_s27 }
  0x1b   :  { %p546_p11 = scmp.ne.s32.totalorder %s29_s27, %s545_s8  ;;  %p551_p13 = scmp.lt.s32.totalorder %s545_s8, %s545_s8 }
  0x1d   :  { %p552_p0 = por %p551_p13, %p550_p12 }
  0x1f   :  { %p553_p1 = pnand %p552_p0, %p546_p11 }
  0x21   :  { %556 = shalt.err (!%p553_p1)
}
  0x22   :  { %34 = dma.hbm_to_vmem [thread:$0]  %s755_s1, 2048, %s29_s27, [#allocation6], %s586_s22, %s586_s22, %s587_s23  }
  0x23   :  { %579 = dma.done.wait [#allocation3], 2048  }
  0x24   :  { %580 = vsyncadd [#allocation3], 4294965248 }
  0x25   :  { %581 = dma.done.wait [#allocation6], 2048  }
  0x26   :  { %582 = vsyncadd [#allocation6], 4294965248  ;;  %v640_v0 = vld [vmem:[#allocation2] sm:$0xff]  ;;  %v642_v1 = vld [vmem:[#allocation2 + $0x8] sm:$0xff] }
  0x27   :  { %v644_v2 = vld [vmem:[#allocation2 + $0x10] sm:$0xff]  ;;  %v646_v3 = vld [vmem:[#allocation2 + $0x18] sm:$0xff]  ;;  %v648_v4 = vld [vmem:[#allocation2 + $0x20] sm:$0xff] }
  0x28   :  { %v650_v5 = vld [vmem:[#allocation2 + $0x28] sm:$0xff]  ;;  %v652_v6 = vld [vmem:[#allocation2 + $0x30] sm:$0xff]  ;;  %v654_v7 = vld [vmem:[#allocation2 + $0x38] sm:$0xff]  ;;  %v59_v9 = vmin.f32 %v640_v0, %v648_v4  ;;  %v83_v11 = vmax.f32 %v640_v0, %v648_v4 }
  0x29   :  { %v656_v8 = vld [vmem:[#allocation2 + $0x40] sm:$0xff]  ;;  %v60_v10 = vmin.f32 %v642_v1, %v650_v5  ;;  %v84_v12 = vmax.f32 %v642_v1, %v650_v5  ;;  %v666_v13 = vld [vmem:[#allocation2 + $0x48] sm:$0xff]  ;;  %v668_v14 = vld [vmem:[#allocation2 + $0x50] sm:$0xff]  ;;  %v61_v16 = vmin.f32 %v644_v2, %v652_v6  ;;  %v62_v17 = vmin.f32 %v646_v3, %v654_v7 }
  0x2a   :  { %v670_v15 = vld [vmem:[#allocation2 + $0x58] sm:$0xff]  ;;  %v85_v18 = vmax.f32 %v644_v2, %v652_v6  ;;  %v86_v19 = vmax.f32 %v646_v3, %v654_v7  ;;  %v680_v20 = vld [vmem:[#allocation2 + $0x60] sm:$0xff]  ;;  %v682_v21 = vld [vmem:[#allocation2 + $0x68] sm:$0xff]  ;;  %v63_v23 = vmin.f32 %v59_v9, %v656_v8  ;;  %v87_v25 = vmax.f32 %v83_v11, %v656_v8 }
  0x2b   :  { %v684_v22 = vld [vmem:[#allocation2 + $0x70] sm:$0xff]  ;;  %v64_v24 = vmin.f32 %v60_v10, %v666_v13  ;;  %v88_v26 = vmax.f32 %v84_v12, %v666_v13  ;;  %v690_v27 = vld [vmem:[#allocation2 + $0x78] sm:$0xff]  ;;  %v65_v28 = vmin.f32 %v61_v16, %v668_v14  ;;  %v66_v29 = vmin.f32 %v62_v17, %v670_v15  ;;  %v145_v46 = vld [vmem:[#allocation5] sm:$0xff] }
  0x2c   :  { %v89_v30 = vmax.f32 %v85_v18, %v668_v14  ;;  %v90_v31 = vmax.f32 %v86_v19, %v670_v15  ;;  %v67_v32 = vmin.f32 %v63_v23, %v680_v20  ;;  %v91_v34 = vmax.f32 %v87_v25, %v680_v20  ;;  %v146_v47 = vld [vmem:[#allocation5 + $0x8] sm:$0xff]  ;;  %v147_v48 = vld [vmem:[#allocation5 + $0x10] sm:$0xff]  ;;  %v148_v50 = vld [vmem:[#allocation5 + $0x18] sm:$0xff] }
  0x2d   :  { %v68_v33 = vmin.f32 %v64_v24, %v682_v21  ;;  %v92_v35 = vmax.f32 %v88_v26, %v682_v21  ;;  %v69_v36 = vmin.f32 %v65_v28, %v684_v22  ;;  %v70_v37 = vmin.f32 %v66_v29, %v690_v27  ;;  %v149_v52 = vld [vmem:[#allocation5 + $0x20] sm:$0xff]  ;;  %v150_v53 = vld [vmem:[#allocation5 + $0x28] sm:$0xff]  ;;  %v151_v55 = vld [vmem:[#allocation5 + $0x30] sm:$0xff] }
  0x2e   :  { %v93_v38 = vmax.f32 %v89_v30, %v684_v22  ;;  %v94_v39 = vmax.f32 %v90_v31, %v690_v27  ;;  %v452_v49 = vpack.c.bf16 %v146_v47, %v145_v46  ;;  %v456_v51 = vpack.c.bf16 %v148_v50, %v147_v48  ;;  %v152_v56 = vld [vmem:[#allocation5 + $0x38] sm:$0xff]  ;;  %v153_v58 = vld [vmem:[#allocation5 + $0x40] sm:$0xff]  ;;  %v154_v59 = vld [vmem:[#allocation5 + $0x48] sm:$0xff] }
  0x2f   :  { %v71_v40 = vmin.f32 %v67_v32, %v68_v33  ;;  %v72_v41 = vmin.f32 %v69_v36, %v70_v37  ;;  %v95_v42 = vmax.f32 %v91_v34, %v92_v35  ;;  %v460_v54 = vpack.c.bf16 %v150_v53, %v149_v52  ;;  %v155_v61 = vld [vmem:[#allocation5 + $0x50] sm:$0xff]  ;;  %v156_v62 = vld [vmem:[#allocation5 + $0x58] sm:$0xff]  ;;  %v157_v9 = vld [vmem:[#allocation5 + $0x60] sm:$0xff] }
  0x30   :  { %v96_v43 = vmax.f32 %v93_v38, %v94_v39  ;;  %453 = vmatprep.subr.bf16.mxu0 %v452_v49  ;;  %484 = vmatprep.subr.bf16.mxu1 %v452_v49  ;;  %v464_v57 = vpack.c.bf16 %v152_v56, %v151_v55  ;;  %v468_v60 = vpack.c.bf16 %v154_v59, %v153_v58  ;;  %v158_v10 = vld [vmem:[#allocation5 + $0x68] sm:$0xff]  ;;  %v159_v16 = vld [vmem:[#allocation5 + $0x70] sm:$0xff]  ;;  %v160_v17 = vld [vmem:[#allocation5 + $0x78] sm:$0xff] }
  0x31   :  { %v73_v44 = vmin.f32 %v71_v40, %v72_v41  ;;  %455 = vmatpush3.bf16.msra.mxu0 %v452_v49  ;;  %492 = vmatpush3.bf16.msra.mxu1 %v452_v49  ;;  %v472_v63 = vpack.c.bf16 %v156_v62, %v155_v61  ;;  %v476_v11 = vpack.c.bf16 %v158_v10, %v157_v9 }
  0x32   :  { %v97_v45 = vmax.f32 %v95_v42, %v96_v43  ;;  %457 = vmatprep.subr.bf16.mxu0 %v456_v51  ;;  %485 = vmatprep.subr.bf16.mxu1 %v456_v51  ;;  %v480_v19 = vpack.c.bf16 %v160_v17, %v159_v16 }
  0x33   :  { %74 = vmin.xlane.f32.xlu0 %v73_v44 }
  0x35   :  { %459 = vmatpush3.bf16.msra.mxu0 %v456_v51  ;;  %493 = vmatpush3.bf16.msra.mxu1 %v456_v51 }
  0x36   :  { %461 = vmatprep.subr.bf16.mxu0 %v460_v54  ;;  %486 = vmatprep.subr.bf16.mxu1 %v460_v54 }
  0x37   :  { %98 = vmax.xlane.f32.xlu0 %v97_v45 }
  0x39   :  { %463 = vmatpush3.bf16.msra.mxu0 %v460_v54  ;;  %494 = vmatpush3.bf16.msra.mxu1 %v460_v54 }
  0x3a   :  { %465 = vmatprep.subr.bf16.mxu0 %v464_v57  ;;  %487 = vmatprep.subr.bf16.mxu1 %v464_v57 }
  0x3d   :  { %467 = vmatpush3.bf16.msra.mxu0 %v464_v57  ;;  %495 = vmatpush3.bf16.msra.mxu1 %v464_v57 }
  0x3e   :  { %469 = vmatprep.subr.bf16.mxu0 %v468_v60  ;;  %488 = vmatprep.subr.bf16.mxu1 %v468_v60 }
  0x41   :  { %471 = vmatpush3.bf16.msra.mxu0 %v468_v60  ;;  %496 = vmatpush3.bf16.msra.mxu1 %v468_v60 }
  0x42   :  { %473 = vmatprep.subr.bf16.mxu0 %v472_v63  ;;  %489 = vmatprep.subr.bf16.mxu1 %v472_v63 }
  0x45   :  { %475 = vmatpush3.bf16.msra.mxu0 %v472_v63  ;;  %497 = vmatpush3.bf16.msra.mxu1 %v472_v63 }
  0x46   :  { %477 = vmatprep.subr.bf16.mxu0 %v476_v11  ;;  %490 = vmatprep.subr.bf16.mxu1 %v476_v11 }
  0x49   :  { %479 = vmatpush3.bf16.msra.mxu0 %v476_v11  ;;  %498 = vmatpush3.bf16.msra.mxu1 %v476_v11 }
  0x4a   :  { %481 = vmatprep.subr.bf16.mxu0 %v480_v19  ;;  %491 = vmatprep.subr.bf16.mxu1 %v480_v19 }
  0x4d   :  { %483 = vmatpush3.bf16.msra.mxu0 %v480_v19  ;;  %499 = vmatpush3.bf16.msra.mxu1 %v480_v19 }
  0xc0   :  { %v75_v12 = vpop.xlane.xlu0 %74 }
  0xc1   :  { %v76_v18 = vrot.slane %v75_v12, 4 }
  0xc3   :  { %v77_v23 = vmin.f32 %v75_v12, %v76_v18 }
  0xc4   :  { %v99_v24 = vpop.xlane.xlu0 %98 }
  0xc5   :  { %v78_v25 = vrot.slane %v77_v23, 2  ;;  %v100_v26 = vrot.slane %v99_v24, 4 }
  0xc7   :  { %v101_v28 = vmax.f32 %v99_v24, %v100_v26  ;;  %v79_v29 = vmin.f32 %v77_v23, %v78_v25  ;;  %v363_v23 = vld [vmem:[%s756_s2] ss:$0 sm:$0xff]  ;;  %s589_s2 = smov [#allocation7]  }
  0xc8   :  { %s350_s15 = sshll.u32 %s589_s2, 4  ;;  %s351_s15 = int_to_ptr.vmem [resolvable:$true] %s350_s15 }
  0xc9   :  { %v102_v30 = vrot.slane %v101_v28, 2  ;;  %v80_v31 = vrot.slane %v79_v29, 1  ;;  %s557_s16 = scalar_lea.vmem %s351_s15, 2048  ;;  %p562_p3 = scmp.lt.s32.totalorder %s351_s15, %s351_s15 }
  0xca   :  { %p558_p2 = scmp.ne.s32.totalorder %s351_s15, %s557_s16  ;;  %p563_p4 = scmp.lt.s32.totalorder %s557_s16, %s557_s16 }
  0xcb   :  { %v103_v32 = vmax.f32 %v101_v28, %v102_v30  ;;  %v81_v33 = vmin.f32 %v79_v29, %v80_v31 }
  0xcc   :  { %p564_p5 = por %p563_p4, %p562_p3 }
  0xcd   :  { %500 = vpush %v81_v33  ;;  %v104_v34 = vrot.slane %v103_v32, 1 }
  0xce   :  { %p565_p6 = pnand %p564_p5, %p558_p2 }
  0xcf   :  { %v105_v35 = vmax.f32 %v103_v32, %v104_v34 }
  0xd1   :  { %502 = vpush %v105_v35 }
  0xfe   :  { %s501_s1 = spop %500 }
  0xff   :  { %v111_v38 = vstv %s501_s1 }
 0x100   :  { %v112_v39 = vsub.f32 %v640_v0, %v111_v38  ;;  %v120_v40 = vsub.f32 %v656_v8, %v111_v38  ;;  %v113_v41 = vsub.f32 %v642_v1, %v111_v38  ;;  %v121_v42 = vsub.f32 %v666_v13, %v111_v38 }
 0x101   :  { %v114_v44 = vsub.f32 %v644_v2, %v111_v38  ;;  %v122_v45 = vsub.f32 %v668_v14, %v111_v38  ;;  %v115_v52 = vsub.f32 %v646_v3, %v111_v38  ;;  %v123_v53 = vsub.f32 %v670_v15, %v111_v38 }
 0x102   :  { %s503_s10 = spop %502  ;;  %v116_v54 = vsub.f32 %v648_v4, %v111_v38  ;;  %v124_v55 = vsub.f32 %v680_v20, %v111_v38  ;;  %v117_v60 = vsub.f32 %v650_v5, %v111_v38  ;;  %v125_v61 = vsub.f32 %v682_v21, %v111_v38 }
 0x103   :  { %s107_s11 = ssub.f32 %s503_s10, %s501_s1  ;;  %v118_v62 = vsub.f32 %v652_v6, %v111_v38  ;;  %v126_v63 = vsub.f32 %v684_v22, %v111_v38  ;;  %v119_v16 = vsub.f32 %v654_v7, %v111_v38  ;;  %v127_v17 = vsub.f32 %v690_v27, %v111_v38 }
 0x105   :  { %v108_v36 = vstv %s107_s11 }
 0x106   :  { %511 = vrcp.f32 %v108_v36 }
 0x110   :  { %v512_v37 = vpop.eup %511 }
 0x111   :  { %504 = vpush %v512_v37 }
 0x142   :  { %s505_s12 = spop %504 }
 0x143   :  { %v128_v43 = vstv %s505_s12 }
 0x144   :  { %v129_v46 = vmul.f32 %v128_v43, %v112_v39  ;;  %v137_v47 = vmul.f32 %v128_v43, %v120_v40  ;;  %v130_v48 = vmul.f32 %v128_v43, %v113_v41  ;;  %v138_v49 = vmul.f32 %v128_v43, %v121_v42 }
 0x145   :  { %v131_v50 = vmul.f32 %v128_v43, %v114_v44  ;;  %v139_v51 = vmul.f32 %v128_v43, %v122_v45  ;;  %v132_v56 = vmul.f32 %v128_v43, %v115_v52  ;;  %v140_v57 = vmul.f32 %v128_v43, %v123_v53 }
 0x146   :  { %428 = vmatprep.mubr.f32.mxu0 %v129_v46  ;;  %440 = vmatprep.mubr.f32.mxu1 %v137_v47  ;;  %v133_v58 = vmul.f32 %v128_v43, %v116_v54  ;;  %v141_v59 = vmul.f32 %v128_v43, %v124_v55  ;;  %v134_v9 = vmul.f32 %v128_v43, %v117_v60 }
 0x147   :  { %429 = vmatmul.mubr.f32.vlgmr.msra.gmra.mrb[0].mxu0 %v130_v48  ;;  %441 = vmatmul.mubr.f32.vlgmr.msra.gmra.mrb[0].mxu1 %v138_v49  ;;  %v142_v10 = vmul.f32 %v128_v43, %v125_v61  ;;  %v135_v11 = vmul.f32 %v128_v43, %v118_v62  ;;  %v143_v12 = vmul.f32 %v128_v43, %v126_v63 }
 0x148   :  { %431 = vmatprep.mubr.f32.mxu0 %v131_v50  ;;  %443 = vmatprep.mubr.f32.mxu1 %v139_v51  ;;  %v136_v18 = vmul.f32 %v128_v43, %v119_v16  ;;  %v144_v19 = vmul.f32 %v128_v43, %v127_v17 }
 0x14b   :  { %432 = vmatmul.mubr.f32.gmra.mrb[2].mxu0 %v132_v56  ;;  %444 = vmatmul.mubr.f32.gmra.mrb[2].mxu1 %v140_v57 }
 0x14c   :  { %434 = vmatprep.mubr.f32.mxu0 %v133_v58  ;;  %446 = vmatprep.mubr.f32.mxu1 %v141_v59 }
 0x14f   :  { %435 = vmatmul.mubr.f32.gmra.mrb[4].mxu0 %v134_v9  ;;  %447 = vmatmul.mubr.f32.gmra.mrb[4].mxu1 %v142_v10 }
 0x150   :  { %437 = vmatprep.mubr.f32.mxu0 %v135_v11  ;;  %449 = vmatprep.mubr.f32.mxu1 %v143_v12 }
 0x153   :  { %438 = vmatmul.mubr.f32.gmra.mrb[6].mxu0 %v136_v18  ;;  %450 = vmatmul.mubr.f32.gmra.mrb[6].mxu1 %v144_v19 }
 0x21a   :  { %v430_v24 = vpop.f32.mrb[0].mxu0  ;;  %v442_v25 = vpop.f32.mrb[0].mxu1 }
 0x21b   :  { %v240_v26 = vadd.f32 %v430_v24, %v363_v23  ;;  %v280_v28 = vadd.f32 %v442_v25, %v363_v23  ;;  %v234_v29 = vpop.f32.mrb[1].mxu0  ;;  %v274_v30 = vpop.f32.mrb[1].mxu1 }
 0x21c   :  { %v235_v31 = vadd.f32 %v363_v23, %v234_v29  ;;  %v275_v32 = vadd.f32 %v363_v23, %v274_v30 }
 0x21d   :  { %v314_v33 = vadd.f32 %v240_v26, %v642_v1  ;;  %v322_v34 = vadd.f32 %v280_v28, %v666_v13 }
 0x21e   :  { %v313_v35 = vadd.f32 %v235_v31, %v640_v0  ;;  %v321_v36 = vadd.f32 %v275_v32, %v656_v8  ;;  %v433_v37 = vpop.f32.mrb[2].mxu0  ;;  %v445_v38 = vpop.f32.mrb[2].mxu1 }
 0x21f   :  { %330 = vst [vmem:[#allocation7 + $0x8] sm:$0xff] %v314_v33  ;;  %338 = vst [vmem:[#allocation7 + $0x48] sm:$0xff] %v322_v34  ;;  %v250_v39 = vadd.f32 %v433_v37, %v363_v23  ;;  %v290_v40 = vadd.f32 %v445_v38, %v363_v23  ;;  %v244_v41 = vpop.f32.mrb[3].mxu0  ;;  %v284_v42 = vpop.f32.mrb[3].mxu1 }
 0x220   :  { %329 = vst [vmem:[#allocation7] sm:$0xff] %v313_v35  ;;  %337 = vst [vmem:[#allocation7 + $0x40] sm:$0xff] %v321_v36  ;;  %v245_v43 = vadd.f32 %v363_v23, %v244_v41  ;;  %v285_v44 = vadd.f32 %v363_v23, %v284_v42 }
 0x221   :  { %v316_v1 = vadd.f32 %v250_v39, %v646_v3  ;;  %v324_v13 = vadd.f32 %v290_v40, %v670_v15 }
 0x222   :  { %v315_v0 = vadd.f32 %v245_v43, %v644_v2  ;;  %v323_v8 = vadd.f32 %v285_v44, %v668_v14  ;;  %v436_v45 = vpop.f32.mrb[4].mxu0  ;;  %v448_v46 = vpop.f32.mrb[4].mxu1 }
 0x223   :  { %332 = vst [vmem:[#allocation7 + $0x18] sm:$0xff] %v316_v1  ;;  %340 = vst [vmem:[#allocation7 + $0x58] sm:$0xff] %v324_v13  ;;  %v260_v47 = vadd.f32 %v436_v45, %v363_v23  ;;  %v300_v48 = vadd.f32 %v448_v46, %v363_v23  ;;  %v254_v49 = vpop.f32.mrb[5].mxu0  ;;  %v294_v50 = vpop.f32.mrb[5].mxu1 }
 0x224   :  { %331 = vst [vmem:[#allocation7 + $0x10] sm:$0xff] %v315_v0  ;;  %339 = vst [vmem:[#allocation7 + $0x50] sm:$0xff] %v323_v8  ;;  %v255_v51 = vadd.f32 %v363_v23, %v254_v49  ;;  %v295_v52 = vadd.f32 %v363_v23, %v294_v50 }
 0x225   :  { %v318_v3 = vadd.f32 %v260_v47, %v650_v5  ;;  %v326_v15 = vadd.f32 %v300_v48, %v682_v21 }
 0x226   :  { %v317_v2 = vadd.f32 %v255_v51, %v648_v4  ;;  %v325_v14 = vadd.f32 %v295_v52, %v680_v20  ;;  %v439_v53 = vpop.f32.mrb[6].mxu0  ;;  %v451_v54 = vpop.f32.mrb[6].mxu1 }
 0x227   :  { %334 = vst [vmem:[#allocation7 + $0x28] sm:$0xff] %v318_v3  ;;  %342 = vst [vmem:[#allocation7 + $0x68] sm:$0xff] %v326_v15  ;;  %v270_v55 = vadd.f32 %v439_v53, %v363_v23  ;;  %v310_v56 = vadd.f32 %v451_v54, %v363_v23  ;;  %v264_v57 = vpop.f32.mrb[7].mxu0  ;;  %v304_v58 = vpop.f32.mrb[7].mxu1 }
 0x228   :  { %333 = vst [vmem:[#allocation7 + $0x20] sm:$0xff] %v317_v2  ;;  %341 = vst [vmem:[#allocation7 + $0x60] sm:$0xff] %v325_v14  ;;  %v265_v59 = vadd.f32 %v363_v23, %v264_v57  ;;  %v305_v5 = vadd.f32 %v363_v23, %v304_v58 }
 0x229   :  { %v320_v21 = vadd.f32 %v270_v55, %v654_v7  ;;  %v328_v4 = vadd.f32 %v310_v56, %v690_v27 }
 0x22a   :  { %v319_v20 = vadd.f32 %v265_v59, %v652_v6  ;;  %v327_v60 = vadd.f32 %v305_v5, %v684_v22 }
 0x22b   :  { %336 = vst [vmem:[#allocation7 + $0x38] sm:$0xff] %v320_v21  ;;  %344 = vst [vmem:[#allocation7 + $0x78] sm:$0xff] %v328_v4 }
 0x22c   :  { %335 = vst [vmem:[#allocation7 + $0x30] sm:$0xff] %v319_v20  ;;  %343 = vst [vmem:[#allocation7 + $0x70] sm:$0xff] %v327_v60 }
 0x22d   :  { %568 = shalt.err (!%p565_p6)
}
 0x22e   :  { %s569_s19 = scalar_lea.hbm %s757_s3, 2048 }
 0x22f   :  { %p570_p7 = scmp.ne.s32.totalorder %s757_s3, %s569_s19  ;;  %p573_p8 = scmp.lt.u32.totalorder %s569_s19, %s757_s3 }
 0x231   :  { %p575_p9 = pnand %p573_p8, %p570_p7 }
 0x233   :  { %578 = shalt.err (!%p575_p9)
}
 0x234   :  { %356 = dma.vmem_to_hbm [thread:$0]  %s351_s15, 2048, %s757_s3, [#allocation4], %s586_s22, %s586_s22, %s587_s23  }
 0x235   :  { %583 = dma.done.wait [#allocation4], 2048  }
 0x236   :  { %584 = vsyncadd [#allocation4], 4294965248 }
 0x237   :  { %360 = vsyncpa [#allocation3], 1 }
 0x238   :  { %361 = vsyncpa [#allocation6], 1 }
 0x239   :  { %362 = vsyncpa [#allocation4], 1 }

</bundles_post_ra>
